<compile_context>
chip_gen: v7x
topology: tpu7x:2x2x1
jax: 0.10.0
libtpu: 0.0.40
codegen_flags: <defaults>
</compile_context>

<pallas_src>
import jax
import jax.numpy as jnp
from jax import lax
from jax.experimental import pallas as pl
from jax.experimental.pallas import tpu as pltpu

EPS = 1e-6


# --------------------------------------------------------------------------- #
# helpers
# --------------------------------------------------------------------------- #
def _cdiv(a, b):
    return -(-a // b)


def _packable_channels(c):
    """Smallest c' >= c that is a power-of-two divisor of 128 (for c <= 128) or a
    multiple of 128 (for c > 128), so r = 128 // c' points pack exactly into the
    128-lane axis."""
    if c > 128:
        return _cdiv(c, 128) * 128
    p = 1
    while p < c:
        p *= 2
    return p


def _vmem_limit_bytes():
    """Chip-aware VMEM budget: ~96 MiB on v5e/v6e (128 MiB physical), ~48 MiB on
    v7x (64 MiB physical) or when the query is unavailable."""
    cap = 64 * 1024 * 1024
    try:
        cap = int(pltpu.get_tpu_info().vmem_capacity_bytes)
    except Exception:
        pass
    return min((cap * 3) // 4, 96 * 1024 * 1024)


def _largest_divisor_at_most(n, cap):
    cap = max(1, min(n, cap))
    for d in range(cap, 0, -1):
        if n % d == 0:
            return d
    return 1


def _group_allsum(v, c):
    """v: (bt, L) with lane j holding channel (j % c).  Returns, in every lane,
    the sum over all lanes of the same channel: log2(L // c) XLU rotate+add
    rounds (exact f32).  No-op when c == L (channels already one-per-lane)."""
    size = v.shape[-1]
    shift = c
    while shift < size:
        v = v + pltpu.roll(v, shift=shift, axis=v.ndim - 1)
        shift *= 2
    return v


# --------------------------------------------------------------------------- #
# kernels
# --------------------------------------------------------------------------- #
def _make_fused_kernel(n_true, n_extra, c):
    """Whole instance group resident in VMEM: mean, stable variance, normalize and
    affine in one body -> exactly 1 HBM read + 1 HBM write of x."""
    inv_n = 1.0 / float(n_true)
    extra = float(n_extra)

    def kernel(x_ref, w_ref, b_ref, o_ref):
        xf = x_ref[...].astype(jnp.float32)                       # (bt, Np, L)
        # per-channel mean (spread over its lane group)
        mean = _group_allsum(jnp.sum(xf, axis=1), c) * inv_n      # (bt, L)
        centered = xf - mean[:, None, :]
        # "stable" centered variance; padded zero rows added (0 - mean)^2 each,
        # removed analytically below (no per-tile iota mask).
        acc = _group_allsum(jnp.sum(centered * centered, axis=1), c)
        if n_extra:
            acc = acc - extra * (mean * mean)
        instd = lax.rsqrt(acc * inv_n + EPS)                      # (bt, L)
        scale = (instd * w_ref[...])[:, None, :]                  # (bt, 1, L)
        o_ref[...] = (centered * scale + b_ref[...]).astype(o_ref.dtype)

    return kernel


def _make_stats_kernel(n_true, n_extra, c):
    """Two-pass stats for instances too large for the fused path.  phase 0: per-
    channel mean; phase 1: centered sum of squares -> inverse std.  When the whole
    instance fits in one N-tile (num_t == 1) the x block index is identical across
    the phase axis, so the pipeline does not re-read x from HBM."""
    inv_n = 1.0 / float(n_true)
    extra = float(n_extra)

    def kernel(x_ref, mean_ref, instd_ref):
        # x_ref: (bt, tile_np, L); mean_ref / instd_ref: (bt, 1, L) f32, resident
        # accumulators across the (phase, tile) axes.
        phase = pl.program_id(1)
        t = pl.program_id(2)
        last_t = pl.num_programs(2) - 1
        xf = x_ref[...].astype(jnp.float32)

        # ---- phase 0: per-channel mean (zero padding does not bias the sum)
        @pl.when(jnp.logical_and(phase == 0, t == 0))
        def _():
            mean_ref[...] = jnp.zeros_like(mean_ref)

        @pl.when(phase == 0)
        def _():
            mean_ref[...] += jnp.sum(xf, axis=1, keepdims=True)

        @pl.when(jnp.logical_and(phase == 0, t == last_t))
        def _():
            s = _group_allsum(mean_ref[...][:, 0, :], c)
            mean_ref[...] = (s * inv_n)[:, None, :]

        # ---- phase 1: centered ("stable") variance -> inverse std
        @pl.when(jnp.logical_and(phase == 1, t == 0))
        def _():
            instd_ref[...] = jnp.zeros_like(instd_ref)

        @pl.when(phase == 1)
        def _():
            centered = xf - mean_ref[...]
            instd_ref[...] += jnp.sum(centered * centered, axis=1, keepdims=True)

        @pl.when(jnp.logical_and(phase == 1, t == last_t))
        def _():
            acc = _group_allsum(instd_ref[...][:, 0, :], c)
            if n_extra:
                m = mean_ref[...][:, 0, :]
                acc = acc - extra * (m * m)          # analytic zero-pad correction
            instd_ref[...] = lax.rsqrt(acc * inv_n + EPS)[:, None, :]

    return kernel


def _normalize_kernel(x_ref, mean_ref, instd_ref, w_ref, b_ref, o_ref):
    """Fold mean / instd / weight / bias into one per-lane scale + shift."""
    scale = instd_ref[...] * w_ref[...]              # (bt, 1, L)
    shift = b_ref[...] - mean_ref[...] * scale       # (bt, 1, L)
    y = x_ref[...].astype(jnp.float32) * scale + shift
    o_ref[...] = y.astype(o_ref.dtype)


# --------------------------------------------------------------------------- #
# wrapper
# --------------------------------------------------------------------------- #
def minkowski_stable_instance_norm(x, weight, bias, *,
                                   force_two_pass=False, max_tile_rows=None):
    """x: (B, N, C) densified per-instance features (rows = points);
    weight, bias: (1, C).  `force_two_pass` / `max_tile_rows` are test hooks."""
    B, N, C = x.shape
    out_dtype = x.dtype
    itemsize = x.dtype.itemsize

    # TODO(synk): real Minkowski sparse tensors have variable point counts per
    # instance; support that by scalar-prefetching per-instance counts (divisor
    # + tail correction per instance) instead of the single static N used here.

    # --- lane packing: pad C to a power-of-two divisor of 128 (or multiple of
    #     128) and fold r = 128 // C_pad points into the 128-lane axis.
    C_pad = _packable_channels(C)
    r = 128 // C_pad if C_pad < 128 else 1
    L = r * C_pad

    w = weight.reshape(1, C).astype(jnp.float32)
    b = bias.reshape(1, C).astype(jnp.float32)
    if C_pad != C:
        w = jnp.pad(w, ((0, 0), (0, C_pad - C)), constant_values=1.0)
        b = jnp.pad(b, ((0, 0), (0, C_pad - C)))
    w_l = jnp.tile(w, (1, r))                        # (1, L): lane j -> w[j % C_pad]
    b_l = jnp.tile(b, (1, r))                        # (1, L)

    # --- tiling / path selection against the chip's VMEM budget.
    vmem_limit = _vmem_limit_bytes()
    step_budget = vmem_limit // 2                    # headroom for dbl-buffered in/out + f32 temps

    np_min = _cdiv(N, r)                             # packed rows per instance
    bytes_per_row = L * (4 * itemsize + 12)          # in/out (2x each) + f32 temps, with margin
    fused_inst_bytes = np_min * bytes_per_row
    use_fused = (not force_two_pass) and (fused_inst_bytes <= step_budget)

    if use_fused:
        Np = np_min
        tile_np = Np
        num_t = 1
        bt_cap = max(1, step_budget // fused_inst_bytes)
    else:
        rows_budget = max(8, step_budget // bytes_per_row)
        if max_tile_rows is not None:
            rows_budget = min(rows_budget, max_tile_rows)
        if np_min <= rows_budget:
            tile_np = np_min                         # whole instance per block -> no phase re-read
            Np = np_min
        else:
            # TODO(synk): for instances this large, a resident-instance inner
            # pltpu.emit_pipeline would avoid the phase-1 re-read of x entirely.
            tile_np = max(8, (rows_budget // 8) * 8)
            Np = _cdiv(np_min, tile_np) * tile_np
        num_t = Np // tile_np
        bt_cap = max(1, step_budget // (tile_np * bytes_per_row))

    # keep >= 2 grid steps along the instance axis when possible (v7x has 2 TCs);
    # bt still divides B, but every step now carries at least one whole instance.
    if B >= 2:
        bt_cap = min(bt_cap, B // 2)
    bt = _largest_divisor_at_most(B, bt_cap)
    num_bg = B // bt

    # --- single combined zero-pad (rows + channels), then the free packing reshape.
    N_pad = Np * r
    n_extra = N_pad - N
    if n_extra or C_pad != C:
        x = jnp.pad(x, ((0, 0), (0, n_extra), (0, C_pad - C)))
    xp = x.reshape(B, Np, L)                         # contiguous -> no data movement

    if use_fused:
        # ------------- fused: mean + stable var + normalize, 1R + 1W of x -------------
        out_p = pl.pallas_call(
            _make_fused_kernel(N, n_extra, C_pad),
            out_shape=jax.ShapeDtypeStruct((B, Np, L), out_dtype),
            grid_spec=pltpu.PrefetchScalarGridSpec(
                num_scalar_prefetch=0,
                grid=(num_bg,),
                in_specs=[
                    pl.BlockSpec((bt, Np, L), lambda i: (i, 0, 0)),
                    pl.BlockSpec((1, L), lambda i: (0, 0)),
                    pl.BlockSpec((1, L), lambda i: (0, 0)),
                ],
                out_specs=pl.BlockSpec((bt, Np, L), lambda i: (i, 0, 0)),
            ),
            compiler_params=pltpu.CompilerParams(
                dimension_semantics=("parallel",),
                vmem_limit_bytes=vmem_limit,
            ),
        )(xp, w_l, b_l)
    else:
        # ------------- pass 1: per-instance mean and inverse std -------------
        mean, instd = pl.pallas_call(
            _make_stats_kernel(N, n_extra, C_pad),
            out_shape=(
                jax.ShapeDtypeStruct((B, 1, L), jnp.float32),
                jax.ShapeDtypeStruct((B, 1, L), jnp.float32),
            ),
            grid_spec=pltpu.PrefetchScalarGridSpec(
                num_scalar_prefetch=0,
                grid=(num_bg, 2, num_t),             # (instances, phase, N-tiles)
                in_specs=[
                    pl.BlockSpec((bt, tile_np, L), lambda i, p, t: (i, t, 0)),
                ],
                out_specs=(
                    pl.BlockSpec((bt, 1, L), lambda i, p, t: (i, 0, 0)),
                    pl.BlockSpec((bt, 1, L), lambda i, p, t: (i, 0, 0)),
                ),
            ),
            compiler_params=pltpu.CompilerParams(
                dimension_semantics=("parallel", "arbitrary", "arbitrary"),
                vmem_limit_bytes=vmem_limit,
            ),
        )(xp)

        # ------------- pass 2: normalize + affine (fully parallel) -------------
        out_p = pl.pallas_call(
            _normalize_kernel,
            out_shape=jax.ShapeDtypeStruct((B, Np, L), out_dtype),
            grid_spec=pltpu.PrefetchScalarGridSpec(
                num_scalar_prefetch=0,
                grid=(num_bg, num_t),
                in_specs=[
                    pl.BlockSpec((bt, tile_np, L), lambda i, t: (i, t, 0)),
                    pl.BlockSpec((bt, 1, L), lambda i, t: (i, 0, 0)),
                    pl.BlockSpec((bt, 1, L), lambda i, t: (i, 0, 0)),
                    pl.BlockSpec((1, L), lambda i, t: (0, 0)),
                    pl.BlockSpec((1, L), lambda i, t: (0, 0)),
                ],
                out_specs=pl.BlockSpec((bt, tile_np, L), lambda i, t: (i, t, 0)),
            ),
            compiler_params=pltpu.CompilerParams(
                dimension_semantics=("parallel", "parallel"),
                vmem_limit_bytes=vmem_limit,
            ),
        )(xp, mean, instd, w_l, b_l)

    out = out_p.reshape(B, N_pad, C_pad)
    if N_pad != N or C_pad != C:
        out = out[:, :N, :C]
    return out


# --------------------------------------------------------------------------- #
# reference + self-test
# --------------------------------------------------------------------------- #
def _reference(x, weight, bias):
    mean = jnp.mean(x, axis=1, keepdims=True)
    centered = x - mean
    var = jnp.mean(centered ** 2, axis=1, keepdims=True)
    instd = 1.0 / jnp.sqrt(var + EPS)
    return centered * instd * weight.reshape(1, 1, -1) + bias.reshape(1, 1, -1)


if __name__ == "__main__":
    key = jax.random.PRNGKey(0)
    k1, k2, k3, kw, kb, k4 = jax.random.split(key, 6)

    # 1) module-default shapes/params (2 instances, 16 points, 8 features) -> fused path
    B, N, C = 2, 16, 8
    x = jax.random.normal(k1, (B, N, C), dtype=jnp.float32)
    weight = jnp.ones((1, C), dtype=jnp.float32)   # reset_parameters(): weight=1, bias=0
    bias = jnp.zeros((1, C), dtype=jnp.float32)
    out = jax.block_until_ready(minkowski_stable_instance_norm(x, weight, bias))
    ref = _reference(x, weight, bias)
    assert out.shape == (B, N, C)
    assert jnp.allclose(out, ref, atol=1e-5, rtol=1e-5), "fused path mismatch"

    # 2) forced two-pass fallback on the same data
    out2 = jax.block_until_ready(
        minkowski_stable_instance_norm(x, weight, bias, force_two_pass=True))
    assert jnp.allclose(out2, ref, atol=1e-5, rtol=1e-5), "two-pass path mismatch"

    # 3) two-pass with N-tiling + row padding (analytic tail correction exercised)
    B3, N3, C3 = 2, 272, 8
    x3 = jax.random.normal(k2, (B3, N3, C3), dtype=jnp.float32)
    w3 = jax.random.normal(kw, (1, C3), dtype=jnp.float32)
    b3 = jax.random.normal(kb, (1, C3), dtype=jnp.float32)
    out3 = jax.block_until_ready(
        minkowski_stable_instance_norm(x3, w3, b3, force_two_pass=True, max_tile_rows=8))
    assert jnp.allclose(out3, _reference(x3, w3, b3), atol=1e-4, rtol=1e-4), \
        "tiled two-pass mismatch"

    # 4) fused path with channel padding (C=12 -> 16) and row padding (N=41 -> 48)
    B4, N4, C4 = 3, 41, 12
    x4 = jax.random.normal(k3, (B4, N4, C4), dtype=jnp.float32)
    w4 = jax.random.normal(k4, (1, C4), dtype=jnp.float32)
    b4 = jnp.zeros((1, C4), dtype=jnp.float32)
    out4 = jax.block_until_ready(minkowski_stable_instance_norm(x4, w4, b4))
    assert jnp.allclose(out4, _reference(x4, w4, b4), atol=1e-4, rtol=1e-4), \
        "channel-padded fused mismatch"

    print("KERNEL_OK")
</pallas_src>

<mosaic_0001>
module attributes {stable_mosaic.version = 11 : i64} {
  func.func @kernel(%arg0: i32, %arg1: memref<1x1x128xf32, #tpu.memory_space<vmem>>, %arg2: memref<1x128xf32, #tpu.memory_space<vmem>>, %arg3: memref<1x128xf32, #tpu.memory_space<vmem>>, %arg4: memref<1x1x128xf32, #tpu.memory_space<vmem>>) attributes {dimension_semantics = [#tpu.dimension_semantics<parallel>], iteration_bounds = array<i64: 2>, scalar_prefetch = 0 : i64, scratch_operands = 0 : i64, tpu.core_type = #tpu.core_type<tc>, window_params = [{transform_indices = @transform_0, window_bounds = array<i64: 1, 1, 128>}, {pipeline_mode = #tpu.pipeline_mode<synchronous>, transform_indices = @transform_1, window_bounds = array<i64: 1, 128>}, {pipeline_mode = #tpu.pipeline_mode<synchronous>, transform_indices = @transform_2, window_bounds = array<i64: 1, 128>}, {transform_indices = @transform_3, window_bounds = array<i64: 1, 1, 128>}]} {
    %c0 = arith.constant 0 : index
    %c0_0 = arith.constant 0 : index
    %c0_1 = arith.constant 0 : index
    %0 = vector.load %arg1[%c0, %c0_0, %c0_1] : memref<1x1x128xf32, #tpu.memory_space<vmem>>, vector<1x1x128xf32>
    %cst = arith.constant dense<0.000000e+00> : vector<1x128xf32>
    %1 = vector.multi_reduction <add>, %0, %cst [1] : vector<1x1x128xf32> to vector<1x128xf32>
    %c8_i32 = arith.constant 8 : i32
    %2 = tpu.dynamic_rotate %1 by %c8_i32 dim 1 : vector<1x128xf32>, i32 -> vector<1x128xf32>
    %3 = arith.addf %1, %2 : vector<1x128xf32>
    %c16_i32 = arith.constant 16 : i32
    %4 = tpu.dynamic_rotate %3 by %c16_i32 dim 1 : vector<1x128xf32>, i32 -> vector<1x128xf32>
    %5 = arith.addf %3, %4 : vector<1x128xf32>
    %c32_i32 = arith.constant 32 : i32
    %6 = tpu.dynamic_rotate %5 by %c32_i32 dim 1 : vector<1x128xf32>, i32 -> vector<1x128xf32>
    %7 = arith.addf %5, %6 : vector<1x128xf32>
    %c64_i32 = arith.constant 64 : i32
    %8 = tpu.dynamic_rotate %7 by %c64_i32 dim 1 : vector<1x128xf32>, i32 -> vector<1x128xf32>
    %9 = arith.addf %7, %8 : vector<1x128xf32>
    %cst_2 = arith.constant 6.250000e-02 : f32
    %10 = vector.broadcast %cst_2 : f32 to vector<1x128xf32>
    %11 = arith.mulf %9, %10 : vector<1x128xf32>
    %12 = vector.shape_cast %11 : vector<1x128xf32> to vector<1x1x128xf32>
    %13 = arith.subf %0, %12 : vector<1x1x128xf32>
    %14 = arith.mulf %13, %13 : vector<1x1x128xf32>
    %cst_3 = arith.constant dense<0.000000e+00> : vector<1x128xf32>
    %15 = vector.multi_reduction <add>, %14, %cst_3 [1] : vector<1x1x128xf32> to vector<1x128xf32>
    %c8_i32_4 = arith.constant 8 : i32
    %16 = tpu.dynamic_rotate %15 by %c8_i32_4 dim 1 : vector<1x128xf32>, i32 -> vector<1x128xf32>
    %17 = arith.addf %15, %16 : vector<1x128xf32>
    %c16_i32_5 = arith.constant 16 : i32
    %18 = tpu.dynamic_rotate %17 by %c16_i32_5 dim 1 : vector<1x128xf32>, i32 -> vector<1x128xf32>
    %19 = arith.addf %17, %18 : vector<1x128xf32>
    %c32_i32_6 = arith.constant 32 : i32
    %20 = tpu.dynamic_rotate %19 by %c32_i32_6 dim 1 : vector<1x128xf32>, i32 -> vector<1x128xf32>
    %21 = arith.addf %19, %20 : vector<1x128xf32>
    %c64_i32_7 = arith.constant 64 : i32
    %22 = tpu.dynamic_rotate %21 by %c64_i32_7 dim 1 : vector<1x128xf32>, i32 -> vector<1x128xf32>
    %23 = arith.addf %21, %22 : vector<1x128xf32>
    %cst_8 = arith.constant 6.250000e-02 : f32
    %24 = vector.broadcast %cst_8 : f32 to vector<1x128xf32>
    %25 = arith.mulf %23, %24 : vector<1x128xf32>
    %cst_9 = arith.constant 9.99999997E-7 : f32
    %26 = vector.broadcast %cst_9 : f32 to vector<1x128xf32>
    %27 = arith.addf %25, %26 : vector<1x128xf32>
    %28 = math.rsqrt %27 : vector<1x128xf32>
    %c0_10 = arith.constant 0 : index
    %c0_11 = arith.constant 0 : index
    %29 = vector.load %arg2[%c0_10, %c0_11] : memref<1x128xf32, #tpu.memory_space<vmem>>, vector<1x128xf32>
    %30 = arith.mulf %28, %29 : vector<1x128xf32>
    %31 = vector.shape_cast %30 : vector<1x128xf32> to vector<1x1x128xf32>
    %32 = arith.mulf %13, %31 : vector<1x1x128xf32>
    %c0_12 = arith.constant 0 : index
    %c0_13 = arith.constant 0 : index
    %33 = vector.load %arg3[%c0_12, %c0_13] : memref<1x128xf32, #tpu.memory_space<vmem>>, vector<1x128xf32>
    %34 = vector.shape_cast %33 : vector<1x128xf32> to vector<1x1x128xf32>
    %35 = arith.addf %32, %34 : vector<1x1x128xf32>
    %c0_14 = arith.constant 0 : index
    %c0_15 = arith.constant 0 : index
    %c0_16 = arith.constant 0 : index
    %36 = vector.load %arg4[%c0_14, %c0_15, %c0_16] : memref<1x1x128xf32, #tpu.memory_space<vmem>>, vector<1x1x128xf32>
    tpu.vector_store %arg4[%c0_14, %c0_15, %c0_16], %35 {strides = array<i32>} : memref<1x1x128xf32, #tpu.memory_space<vmem>>, vector<1x1x128xf32>,
    return
  }
  func.func @transform_0(%arg0: i32) -> (i32, i32, i32) {
    %c0_i32 = arith.constant 0 : i32
    %c0_i32_0 = arith.constant 0 : i32
    %c0_i32_1 = arith.constant 0 : i32
    return %arg0, %c0_i32, %c0_i32_0 : i32, i32, i32
  }
  func.func @transform_1(%arg0: i32) -> (i32, i32) {
    %c0_i32 = arith.constant 0 : i32
    %c0_i32_0 = arith.constant 0 : i32
    %c0_i32_1 = arith.constant 0 : i32
    return %c0_i32, %c0_i32_0 : i32, i32
  }
  func.func @transform_2(%arg0: i32) -> (i32, i32) {
    %c0_i32 = arith.constant 0 : i32
    %c0_i32_0 = arith.constant 0 : i32
    %c0_i32_1 = arith.constant 0 : i32
    return %c0_i32, %c0_i32_0 : i32, i32
  }
  func.func @transform_3(%arg0: i32) -> (i32, i32, i32) {
    %c0_i32 = arith.constant 0 : i32
    %c0_i32_0 = arith.constant 0 : i32
    %c0_i32_1 = arith.constant 0 : i32
    return %arg0, %c0_i32, %c0_i32_0 : i32, i32, i32
  }
}

</mosaic_0001>

<bundles_post_ra>
// kernel: tpu_custom_call.1
= control target key start
LH: loop header
LB: loop body
LE: loop exit
PB: predicated region body
PF: predicated region fallthrough
CT: control target
= control target key end

     0   :  { %8 = vsyncpa [#allocation3], 0  ;;  %s649_s0 = inlined_call_operand.hbm [shape: f32[2,1,128], index: 0, kind: input, shape index: {}]   ;;  %s650_s1 = inlined_call_operand.vmem [shape: f32[1,128], index: 1, kind: input, shape index: {}]   ;;  %s651_s2 = inlined_call_operand.vmem [shape: f32[1,128], index: 2, kind: input, shape index: {}]   ;;  %s652_s3 = inlined_call_operand.hbm [shape: f32[2,1,128], index: 3, kind: output, shape index: {}]  }
   0x1   :  { %10 = vsyncpa [#allocation3 + $0x1], 0 }
   0x2   :  { %11 = vsyncpa [#allocation4], 0 }
   0x3   :  { %13 = vsyncpa [#allocation4 + $0x1], 0  ;;  %s481_s12 = smov 0   ;;  %s483_s13 = smov 0  }
   0x4   :  { %s485_s14 = smov 0   ;;  %s487_s15 = smov 0  }
   0x5 LB: > { %s502_s16 = sadd.s32 4294967295, %s453_s15   ;;  %s297_s17 = sadd.s32 4294967294, %s453_s15   ;;  %s453_s15 = sphi %s487_s15, %s667_s15   ;;  %s449_s14 = sphi %s485_s14, %s666_s14   ;;  %s445_s13 = sphi %s483_s13, %s665_s13   ;;  %s441_s12 = sphi %s481_s12, %s664_s12  }
   0x6   : > { %s506_s18 = sadd.s32 1, %s453_s15   ;;  %s26_s19 = sadd.s32 1, %s449_s14 }
   0x7   : > { %s23_s20 = ssub.s32 %s453_s15, %s506_s18  ;;  %p33_p0 = scmp.ne.s32.totalorder %s449_s14, %s445_s13 }
   0x8   : > { %p24_p1 = scmp.eq.s32.totalorder %s23_s20, 0  ;;  %p34_p2 = scmp.eq.s32.totalorder %s453_s15, 0 }
   0x9   : > { %p39_p3 = scmp.ne.s32.totalorder %s445_s13, %s441_s12  ;;  %p40_p4 = scmp.eq.s32.totalorder %s502_s16, 0 }
   0xa   : > { %s518_s21 = scalar_select %p24_p1, %s449_s14, %s26_s19  }
   0xb   : > { %p520_p5 = por %p34_p2, %p33_p0  ;;  %p524_p6 = por %p40_p4, %p39_p3 }
   0xc   : > { %p105_p7 = scmp.eq.s32.totalorder %s502_s16, 1  ;;  %p111_p8 = scmp.eq.s32.totalorder %s297_s17, 1 }
   0xd   : > { %p317_p10 = scmp.lt.s32.totalorder %s453_s15, 2  ;;  %s137_s26 = sand.u32 1, %s449_s14  }
   0xe   : > { %p531_p11 = por %p105_p7, %p33_p0  ;;  %p535_p12 = por %p111_p8, %p39_p3 }
   0xf   : > { %s300_s27 = sshll.u32 %s453_s15, 4  ;;  %s140_s4 = scalar_lea.vmem [#allocation2], %s137_s26 }
  0x10   : > { %s656_s24 = scalar_select %p531_p11, 1, 0 }
  0x11   : > { %s657_s25 = scalar_select %p535_p12, 1, 0 }
  0x12   : > { %s544_s30 = scalar_lea.hbm %s649_s0, %s300_s27  ;;  %s147_s5 = sshll.u32 %s140_s4, 4  ;;  %s546_s5 = int_to_ptr.vmem [resolvable:$true] %s147_s5 }
  0x13   : > { %p550_p13 = pnand %p317_p10, %p520_p5  ;;  %s138_s7 = scalar_lea.sflag [#allocation3], %s137_s26 }
  0x14   : > { %s357_s8 = scalar_lea.hbm %s544_s30, 16  ;;  %s362_s11 = scalar_lea.hbm %s649_s0, 32 }
  0x15   : > { %p358_p2 = scmp.ne.s32.totalorder %s544_s30, %s357_s8  ;;  %p359_p3 = pneg %p550_p13 }
  0x16   : > { %p363_p5 = scmp.lt.u32.totalorder %s544_s30, %s649_s0  ;;  %p364_p8 = scmp.lt.u32.totalorder %s362_s11, %s357_s8 }
  0x17   : > { %p360_p4 = pnand %p359_p3, %p358_p2  ;;  %p366_p9 = scmp.lt.u32.totalorder %s357_s8, %s544_s30 }
  0x18   : > { %p365_p10 = por %p364_p8, %p363_p5 }
  0x19   : > { %p361_p7 = pneg %p360_p4 }
  0x1a   : > { %p367_p0 = por %p366_p9, %p365_p10 }
  0x1c   : > { %p368_p1 = pnand %p367_p0, %p361_p7 }
  0x1e   : > { %371 = shalt.err (!%p368_p1)
}
  0x1f   : > { %s372_s20 = scalar_lea.vmem %s546_s5, 16  ;;  %s455_s22 = smov [#allocation2]  }
  0x20   : > { %p373_p2 = scmp.ne.s32.totalorder %s546_s5, %s372_s20  ;;  %s377_s26 = sshll.u32 %s455_s22, 4  ;;  %s378_s26 = int_to_ptr.vmem [resolvable:$false] %s377_s26 }
  0x21   : > { %s379_s27 = scalar_lea.vmem %s378_s26, 32  ;;  %p380_p11 = scmp.lt.s32.totalorder %s546_s5, %s378_s26 }
  0x22   : > { %p375_p4 = pnand %p373_p2, %p359_p3  ;;  %p381_p5 = scmp.lt.s32.totalorder %s379_s27, %s372_s20 }
  0x24   : > { %p376_p12 = pneg %p375_p4  ;;  %p382_p8 = por %p381_p5, %p380_p11 }
  0x26   : > { %p383_p9 = pnand %p382_p8, %p376_p12 }
  0x28   : > { %386 = shalt.err (!%p383_p9)
}
  0x29   : > { %312 = dma.hbm_to_vmem [thread:$0]  (!%p550_p13), %s544_s30, 16, %s546_s5, %s138_s7  }
  0x2a   : > { %p659_p0 = scmp.lt.s32.totalorder %s453_s15, 3  ;;  %p660_p1 = scmp.ge.s32.totalorder %s453_s15, 1 }
  0x2c   : > { %p153_p3 = pnand %p660_p1, %p659_p0 }
  0x2d   : > { %s586_s28 = sand.u32 (!%p153_p3), 1, %s445_s13  }
  0x2e   : > { %156 = sbr.rel (%p153_p3) target bundleno = 1032 (0x408), region = 32  ;;  %s159_s29 = scalar_lea.sflag (!%p153_p3), [#allocation3], %s586_s28 }
  0x2f   : > { %s161_s4 = scalar_lea.vmem (!%p153_p3), [#allocation2], %s586_s28 }
  0x35   : > { %432 = dma.done.wait (%p524_p6), %s159_s29, 16  }
  0x36   : > { %434 = vsyncadd (%p524_p6), %s159_s29, 4294967280  ;;  %v182_v0 = vld [vmem:[%s161_s4] sm:$0x1]  ;;  %s456_s6 = smov 8   ;;  %s457_s30 = smov 16  }
  0x37   : > { %184 = vrot.lane.b32.xlu0 %v182_v0, %s456_s6  ;;  %s458_s5 = smov 32   ;;  %s459_s7 = smov 64   ;;  %v215_v22 = vld [vmem:[%s650_s1] sm:$0x1] }
  0x38   : > { %v218_v25 = vld [vmem:[%s651_s2] sm:$0x1]  ;;  %s302_s11 = sshll.u32 %s502_s16, 4  ;;  %s181_s17 = scalar_lea.vmem [#allocation5], %s586_s28 }
  0x39   : > { %s234_s19 = sshll.u32 %s181_s17, 4  ;;  %s605_s26 = scalar_lea.hbm %s652_s3, %s302_s11  ;;  %s607_s19 = int_to_ptr.vmem [resolvable:$true] %s234_s19 }
  0x3a   : > { %s222_s27 = scalar_lea.sflag [#allocation4], %s586_s28  ;;  %s387_s29 = scalar_lea.vmem %s607_s19, 16 }
  0x3b   : > { %p388_p6 = scmp.ne.s32.totalorder %s607_s19, %s387_s29  ;;  %p661_p11 = scmp.ne.s32.totalorder %s656_s24, 0 }
  0x3c   : > { %s460_s16 = smov [#allocation5]  }
  0x3d   : > { %p389_p12 = pnand %p388_p6, %p661_p11  ;;  %s391_s4 = sshll.u32 %s460_s16, 4  ;;  %s392_s4 = int_to_ptr.vmem [resolvable:$false] %s391_s4 }
  0x3e   : > { %p394_p7 = scmp.lt.s32.totalorder %s607_s19, %s392_s4 }
  0x3f   : > { %p390_p13 = pneg %p389_p12 }
  0xa9   : > { %v185_v1 = vpop.permute.xlu0 %184 }
  0xaa   : > { %v186_v2 = vadd.f32 %v185_v1, %v182_v0 }
  0xac   : > { %187 = vrot.lane.b32.xlu0 %v186_v2, %s457_s30 }
 0x11e   : > { %v188_v3 = vpop.permute.xlu0 %187 }
 0x11f   : > { %v189_v4 = vadd.f32 %v188_v3, %v186_v2 }
 0x121   : > { %190 = vrot.lane.b32.xlu1 %v189_v4, %s458_s5 }
 0x193   : > { %v191_v5 = vpop.permute.xlu1 %190 }
 0x194   : > { %v192_v6 = vadd.f32 %v191_v5, %v189_v4 }
 0x196   : > { %193 = vrot.lane.b32.xlu1 %v192_v6, %s459_s7 }
 0x208   : > { %v194_v7 = vpop.permute.xlu1 %193 }
 0x209   : > { %v195_v8 = vadd.f32 %v194_v7, %v192_v6 }
 0x20b   : > { %v196_v9 = vmul.f32 0.0625, %v195_v8 }
 0x20d   : > { %v197_v10 = vsub.f32 %v182_v0, %v196_v9 }
 0x20f   : > { %v198_v11 = vmul.f32 %v197_v10, %v197_v10 }
 0x211   : > { %200 = vrot.lane.b32.xlu0 %v198_v11, %s456_s6  ;;  %s393_s6 = scalar_lea.vmem %s392_s4, 32 }
 0x212   : > { %p395_p10 = scmp.lt.s32.totalorder %s393_s6, %s387_s29 }
 0x214   : > { %p396_p2 = por %p395_p10, %p394_p7 }
 0x216   : > { %p397_p4 = pnand %p396_p2, %p390_p13 }
 0x283   : > { %v201_v12 = vpop.permute.xlu0 %200 }
 0x284   : > { %v202_v13 = vadd.f32 %v201_v12, %v198_v11 }
 0x286   : > { %203 = vrot.lane.b32.xlu1 %v202_v13, %s457_s30 }
 0x2f8   : > { %v204_v14 = vpop.permute.xlu1 %203 }
 0x2f9   : > { %v205_v15 = vadd.f32 %v204_v14, %v202_v13 }
 0x2fb   : > { %206 = vrot.lane.b32.xlu0 %v205_v15, %s458_s5 }
 0x36d   : > { %v207_v16 = vpop.permute.xlu0 %206 }
 0x36e   : > { %v208_v17 = vadd.f32 %v207_v16, %v205_v15 }
 0x370   : > { %209 = vrot.lane.b32.xlu1 %v208_v17, %s459_s7 }
 0x3e2   : > { %v210_v18 = vpop.permute.xlu1 %209 }
 0x3e3   : > { %v211_v19 = vadd.f32 %v210_v18, %v208_v17 }
 0x3e5   : > { %v212_v20 = vmul.f32 0.0625, %v211_v19 }
 0x3e7   : > { %v213_v21 = vadd.f32 1e-06, %v212_v20 }
 0x3e9   : > { %355 = vrsqrt.f32 %v213_v21 }
 0x3f3   : > { %v356_v23 = vpop.eup %355 }
 0x3f4   : > { %v216_v24 = vmul.f32 %v356_v23, %v215_v22 }
 0x3f6   : > { %v217_v26 = vmul.f32 %v216_v24, %v197_v10 }
 0x3f8   : > { %v219_v27 = vadd.f32 %v218_v25, %v217_v26 }
 0x3fa   : > { %220 = vst [vmem:[%s181_s17] sm:$0x1] %v219_v27 }
 0x3fb   : > { %400 = shalt.err (!%p397_p4)
}
 0x3fc   : > { %s401_s28 = scalar_lea.hbm %s605_s26, 16  ;;  %s405_s7 = scalar_lea.hbm %s652_s3, 32 }
 0x3fd   : > { %p402_p5 = scmp.ne.s32.totalorder %s605_s26, %s401_s28  ;;  %p406_p0 = scmp.lt.u32.totalorder %s605_s26, %s652_s3 }
 0x3fe   : > { %p407_p1 = scmp.lt.u32.totalorder %s405_s7, %s401_s28  ;;  %p409_p6 = scmp.lt.u32.totalorder %s401_s28, %s605_s26 }
 0x3ff   : > { %p403_p8 = pnand %p402_p5, %p661_p11 }
 0x400   : > { %p408_p3 = por %p407_p1, %p406_p0 }
 0x401   : > { %p404_p9 = pneg %p403_p8 }
 0x402   : > { %p410_p12 = por %p409_p6, %p408_p3 }
 0x404   : > { %p411_p13 = pnand %p410_p12, %p404_p9 }
 0x406   : > { %414 = shalt.err (!%p411_p13)
}
 0x407   : > { %307 = dma.vmem_to_hbm [thread:$0]  (%p661_p11), %s607_s19, 16, %s605_s26, %s222_s27  }
 0x408 PF: > { %s246_s9 = sand.u32 1, %s441_s12   ;;  %p662_p7 = scmp.ne.s32.totalorder %s657_s25, 0 }
 0x409   : > { %p663_p10 = scmp.ge.s32.totalorder %s453_s15, 2  ;;  %s247_s10 = scalar_lea.sflag [#allocation4], %s246_s9 }
 0x40b   : > { %p314_p2 = pnand %p663_p10, %p662_p7 }
 0x40d   : > { %436 = dma.done.wait (!%p314_p2), %s247_s10, 16  }
 0x40e   : > { %438 = vsyncadd (!%p314_p2), %s247_s10, 4294967280  ;;  %p16_p4 = scmp.ge.s32.totalorder %s506_s18, 4   ;;  %s664_s12 = smov %s445_s13 }
 0x40f   : > { %s665_s13 = smov %s449_s14  ;;  %s666_s14 = smov %s518_s21 }
 0x410   : > { %s667_s15 = smov %s506_s18  ;;  %18 = sbr.rel (!%p16_p4) target bundleno = 5 (0x5), region = 77 }
 0x417   :  { %251 = vsyncpa [#allocation3], 1 }
 0x418   :  { %253 = vsyncpa [#allocation3 + $0x1], 1 }
 0x419   :  { %254 = vsyncpa [#allocation4], 1 }
 0x41a   :  { %256 = vsyncpa [#allocation4 + $0x1], 1 }

</bundles_post_ra>
